<compile_context>
chip_gen: v7x
topology: tpu7x:2x2x1
jax: 0.10.0
libtpu: 0.0.40
codegen_flags: <defaults>
</compile_context>

<pallas_src>
import functools

import jax
import jax.numpy as jnp
from jax import lax
from jax.experimental import pallas as pl
from jax.experimental.pallas import tpu as pltpu


def _round_up(v, m):
    return ((v + m - 1) // m) * m


def _default_core_shards():
    # TODO(synk): use an official core-count query when available; the getattr
    # fallback keeps this safe (1 shard) on chips that don't expose it.
    try:
        nc = getattr(jax.devices()[0], "num_cores", 1)
        nc = int(nc) if nc else 1
    except Exception:
        nc = 1
    return max(1, min(nc, 2))


def _softloss_kernel(x_ref, t_ref, o_ref, acc_ref, *,
                     n_total, tile_rows, inner_steps,
                     targets_normalized, any_padding):
    """One (TN, C) tile of the soft-label cross-entropy loss.

    x_ref, t_ref : [TN, C] VMEM tiles (logits / soft targets).
    o_ref        : (1, 8, 128) f32 VMEM output block (per core-shard partial).
    acc_ref      : (TN, 1) f32 VMEM scratch accumulator (lives across steps).
    """
    shard = pl.program_id(0)   # "parallel" axis (TensorCore shard)
    step = pl.program_id(1)    # "arbitrary" axis (row blocks, carries acc)

    @pl.when(step == 0)
    def _init():
        acc_ref[...] = jnp.zeros_like(acc_ref)

    x = x_ref[...].astype(jnp.float32)
    t = t_ref[...].astype(jnp.float32)
    c = x_ref.shape[1]

    # Logical-shape (C, 1) ones so padded lanes contribute zero to the dots.
    ones_c = jnp.ones((c, 1), jnp.float32)

    # Per-row max stays on the XLU; all lane-axis sums go through the MXU.
    m = jnp.max(x, axis=1, keepdims=True)                               # [TN, 1]
    p = jnp.exp(x - m)                                                  # EUP
    e_sum = jnp.dot(p, ones_c, preferred_element_type=jnp.float32)      # [TN, 1]
    tx_sum = jnp.dot(t * x, ones_c, preferred_element_type=jnp.float32)  # [TN, 1]
    lse = jnp.log(e_sum)                                                # EUP

    # Per-row loss without materializing log_probs:
    #   -sum_c t*(x - m - lse) = sum_c(t)*(m + lse) - sum_c(t*x)
    if targets_normalized:
        row_loss = (m + lse) - tx_sum
    else:
        t_sum = jnp.dot(t, ones_c, preferred_element_type=jnp.float32)
        row_loss = t_sum * (m + lse) - tx_sum

    if not any_padding:
        # Trace-time: every tile is full of valid rows -> no masking at all.
        acc_ref[...] += row_loss
    else:
        row_start = (shard * inner_steps + step) * tile_rows

        @pl.when(row_start + tile_rows <= n_total)
        def _full_tile():
            acc_ref[...] += row_loss

        @pl.when(row_start + tile_rows > n_total)
        def _tail_tile():
            ids = row_start + lax.broadcasted_iota(jnp.int32, row_loss.shape, 0)
            acc_ref[...] += jnp.where(ids < n_total, row_loss, jnp.float32(0.0))

    @pl.when(step == pl.num_programs(1) - 1)
    def _finalize():
        total = jnp.sum(acc_ref[...])          # single cross-sublane reduce
        o_ref[...] = jnp.zeros_like(o_ref) + total


def softloss_n(inputs, targets, *, tile_rows=4096, targets_normalized=False,
               num_core_shards=None):
    """Pallas implementation of Softloss_N.forward(inputs, targets) -> scalar.

    inputs, targets: [N, C] arrays.  bf16 inputs/targets are the fast path
    (half the HBM traffic); math is done in f32 inside the kernel.
    targets_normalized=True skips the sum(t) reduction (t rows sum to 1).
    num_core_shards=2 shards the batch across the two v7x TensorCores
    (correct, just sequential, on single-core chips).
    """
    assert inputs.shape == targets.shape and inputs.ndim == 2
    n, c = inputs.shape

    # Sublane multiple: 8 for 32-bit dtypes, 16 for 16-bit (packed rows).
    itemsize = min(jnp.dtype(inputs.dtype).itemsize,
                   jnp.dtype(targets.dtype).itemsize)
    mult = 8 if itemsize >= 4 else (16 if itemsize == 2 else 32)

    tn = min(int(tile_rows), _round_up(n, mult))
    tn = max(_round_up(tn, mult), mult)

    nb = pl.cdiv(n, tn)                       # valid row blocks
    if num_core_shards is None:
        num_core_shards = _default_core_shards()
    s = max(1, min(int(num_core_shards), nb))
    t_steps = pl.cdiv(nb, s)                  # row blocks per shard
    any_padding = (s * t_steps * tn) != n
    last_block = nb - 1

    def row_index_map(si, ti):
        blk = si * t_steps + ti
        if s * t_steps > nb:                  # clamp shards' overhang blocks
            blk = jnp.minimum(blk, last_block)
        return (blk, 0)

    kernel = functools.partial(
        _softloss_kernel, n_total=n, tile_rows=tn, inner_steps=t_steps,
        targets_normalized=targets_normalized, any_padding=any_padding)

    out = pl.pallas_call(
        kernel,
        out_shape=jax.ShapeDtypeStruct((s, 8, 128), jnp.float32),
        grid_spec=pltpu.PrefetchScalarGridSpec(
            num_scalar_prefetch=0,
            grid=(s, t_steps),
            in_specs=[
                pl.BlockSpec((tn, c), row_index_map),
                pl.BlockSpec((tn, c), row_index_map),
            ],
            out_specs=pl.BlockSpec((1, 8, 128), lambda si, ti: (si, 0, 0)),
            scratch_shapes=[pltpu.VMEM((tn, 1), jnp.float32)],
        ),
        compiler_params=pltpu.CompilerParams(
            dimension_semantics=("parallel", "arbitrary"),
        ),
    )(inputs, targets)

    # Per-shard partial sums -> scalar mean over the TOTAL batch.
    return jnp.sum(out[:, 0, 0]) / jnp.float32(n)


def softloss_n_ref(inputs, targets):
    log_probs = jax.nn.log_softmax(inputs.astype(jnp.float32), axis=1)
    return jnp.mean(jnp.sum(-targets.astype(jnp.float32) * log_probs, axis=1))


if __name__ == "__main__":
    num_classes = 51   # matches Softloss_N(num_classes=51)

    key = jax.random.PRNGKey(0)
    k_x, k_t, k_x2, k_t2 = jax.random.split(key, 4)

    # --- Test 1: small batch, single tile, f32 ---
    batch = 8
    inputs = jax.random.normal(k_x, (batch, num_classes), dtype=jnp.float32)
    raw = jax.random.uniform(k_t, (batch, num_classes), dtype=jnp.float32)
    targets = raw / jnp.sum(raw, axis=1, keepdims=True)

    loss = jax.block_until_ready(softloss_n(inputs, targets))
    loss_ref = jax.block_until_ready(softloss_n_ref(inputs, targets))
    assert jnp.allclose(loss, loss_ref, rtol=1e-5, atol=1e-5), (loss, loss_ref)

    # --- Test 2: multi-tile grid, explicit 2-way core shard, masked tail +
    #             clamped out-of-range blocks (runs sequentially on 1-TC chips) ---
    batch2 = 300
    inputs2 = jax.random.normal(k_x2, (batch2, num_classes), dtype=jnp.float32)
    raw2 = jax.random.uniform(k_t2, (batch2, num_classes), dtype=jnp.float32)
    targets2 = raw2 / jnp.sum(raw2, axis=1, keepdims=True)

    loss2 = jax.block_until_ready(
        softloss_n(inputs2, targets2, tile_rows=128, num_core_shards=2))
    loss2_ref = jax.block_until_ready(softloss_n_ref(inputs2, targets2))
    assert jnp.allclose(loss2, loss2_ref, rtol=1e-5, atol=1e-5), (loss2, loss2_ref)

    # --- Test 3: bf16 fast path + normalized-targets shortcut ---
    loss3 = jax.block_until_ready(
        softloss_n(inputs2.astype(jnp.bfloat16), targets2.astype(jnp.bfloat16),
                   tile_rows=128, targets_normalized=True))
    loss3_ref = jax.block_until_ready(
        softloss_n_ref(inputs2.astype(jnp.bfloat16), targets2.astype(jnp.bfloat16)))
    assert jnp.allclose(loss3, loss3_ref, rtol=2e-2, atol=2e-2), (loss3, loss3_ref)

    print("KERNEL_OK")
</pallas_src>

<mosaic_0001>
module attributes {stable_mosaic.version = 11 : i64} {
  func.func @_softloss_kernel(%arg0: i32, %arg1: i32, %arg2: memref<8x51xf32, #tpu.memory_space<vmem>>, %arg3: memref<8x51xf32, #tpu.memory_space<vmem>>, %arg4: memref<1x8x128xf32, #tpu.memory_space<vmem>>, %arg5: memref<8x1xf32, #tpu.memory_space<vmem>>) attributes {dimension_semantics = [#tpu.dimension_semantics<parallel>, #tpu.dimension_semantics<arbitrary>], iteration_bounds = array<i64: 1, 1>, scalar_prefetch = 0 : i64, scratch_operands = 1 : i64, tpu.core_type = #tpu.core_type<tc>, window_params = [{transform_indices = @transform_0, window_bounds = array<i64: 8, 51>}, {transform_indices = @transform_1, window_bounds = array<i64: 8, 51>}, {transform_indices = @transform_2, window_bounds = array<i64: 1, 8, 128>}]} {
    %c0_i32 = arith.constant 0 : i32
    %0 = arith.cmpi eq, %arg1, %c0_i32 : i32
    %1 = arith.extui %0 : i1 to i32
    %c0_i32_0 = arith.constant 0 : i32
    %2 = arith.cmpi ne, %1, %c0_i32_0 : i32
    scf.if %2 {
      %cst_14 = arith.constant 0.000000e+00 : f32
      %25 = vector.broadcast %cst_14 : f32 to vector<8x1xf32>
      %c0_15 = arith.constant 0 : index
      %c0_16 = arith.constant 0 : index
      %26 = vector.load %arg5[%c0_15, %c0_16] : memref<8x1xf32, #tpu.memory_space<vmem>>, vector<8x1xf32>
      tpu.vector_store %arg5[%c0_15, %c0_16], %25 {strides = array<i32>} : memref<8x1xf32, #tpu.memory_space<vmem>>, vector<8x1xf32>,
    } else {
    }
    %c0 = arith.constant 0 : index
    %c0_1 = arith.constant 0 : index
    %3 = vector.load %arg2[%c0, %c0_1] : memref<8x51xf32, #tpu.memory_space<vmem>>, vector<8x51xf32>
    %c0_2 = arith.constant 0 : index
    %c0_3 = arith.constant 0 : index
    %4 = vector.load %arg3[%c0_2, %c0_3] : memref<8x51xf32, #tpu.memory_space<vmem>>, vector<8x51xf32>
    %cst = arith.constant 1.000000e+00 : f32
    %5 = vector.broadcast %cst : f32 to vector<51x1xf32>
    %cst_4 = arith.constant dense<0xFF800000> : vector<8xf32>
    %6 = vector.multi_reduction <maximumf>, %3, %cst_4 [1] : vector<8x51xf32> to vector<8xf32>
    %7 = vector.shape_cast %6 : vector<8xf32> to vector<8x1xf32>
    %8 = vector.broadcast %7 : vector<8x1xf32> to vector<8x51xf32>
    %9 = arith.subf %3, %8 : vector<8x51xf32>
    %10 = math.exp %9 : vector<8x51xf32>
    %cst_5 = arith.constant dense<0.000000e+00> : vector<8x1xf32>
    %11 = tpu.matmul %10, %5, %cst_5 {dimension_numbers = #tpu.dot_dimension_numbers<[1], [0], [0], [1], [0, 0, 1, 1], [], []>} : vector<8x51xf32>, vector<51x1xf32>, vector<8x1xf32> -> vector<8x1xf32>
    %12 = arith.mulf %4, %3 : vector<8x51xf32>
    %cst_6 = arith.constant dense<0.000000e+00> : vector<8x1xf32>
    %13 = tpu.matmul %12, %5, %cst_6 {dimension_numbers = #tpu.dot_dimension_numbers<[1], [0], [0], [1], [0, 0, 1, 1], [], []>} : vector<8x51xf32>, vector<51x1xf32>, vector<8x1xf32> -> vector<8x1xf32>
    %14 = math.log %11 : vector<8x1xf32>
    %cst_7 = arith.constant dense<0.000000e+00> : vector<8x1xf32>
    %15 = tpu.matmul %4, %5, %cst_7 {dimension_numbers = #tpu.dot_dimension_numbers<[1], [0], [0], [1], [0, 0, 1, 1], [], []>} : vector<8x51xf32>, vector<51x1xf32>, vector<8x1xf32> -> vector<8x1xf32>
    %16 = arith.addf %7, %14 : vector<8x1xf32>
    %17 = arith.mulf %15, %16 : vector<8x1xf32>
    %18 = arith.subf %17, %13 : vector<8x1xf32>
    %c0_8 = arith.constant 0 : index
    %c0_9 = arith.constant 0 : index
    %19 = vector.load %arg5[%c0_8, %c0_9] : memref<8x1xf32, #tpu.memory_space<vmem>>, vector<8x1xf32>
    %20 = arith.addf %19, %18 : vector<8x1xf32>
    %c0_10 = arith.constant 0 : index
    %c0_11 = arith.constant 0 : index
    %21 = vector.load %arg5[%c0_10, %c0_11] : memref<8x1xf32, #tpu.memory_space<vmem>>, vector<8x1xf32>
    tpu.vector_store %arg5[%c0_10, %c0_11], %20 {strides = array<i32>} : memref<8x1xf32, #tpu.memory_space<vmem>>, vector<8x1xf32>,
    %c0_i32_12 = arith.constant 0 : i32
    %22 = arith.cmpi eq, %arg1, %c0_i32_12 : i32
    %23 = arith.extui %22 : i1 to i32
    %c0_i32_13 = arith.constant 0 : i32
    %24 = arith.cmpi ne, %23, %c0_i32_13 : i32
    scf.if %24 {
      %c0_14 = arith.constant 0 : index
      %c0_15 = arith.constant 0 : index
      %25 = vector.load %arg5[%c0_14, %c0_15] : memref<8x1xf32, #tpu.memory_space<vmem>>, vector<8x1xf32>
      %26 = vector.shape_cast %25 : vector<8x1xf32> to vector<1x8x1xf32>
      %cst_16 = arith.constant dense<0.000000e+00> : vector<1xf32>
      %27 = vector.multi_reduction <add>, %26, %cst_16 [1, 2] : vector<1x8x1xf32> to vector<1xf32>
      %28 = vector.shape_cast %27 : vector<1xf32> to vector<1x1x1xf32>
      %29 = vector.extract %28[0, 0, 0] : f32 from vector<1x1x1xf32>
      %cst_17 = arith.constant 0.000000e+00 : f32
      %30 = vector.broadcast %cst_17 : f32 to vector<1x8x128xf32>
      %31 = vector.broadcast %29 : f32 to vector<1x8x128xf32>
      %32 = arith.addf %30, %31 : vector<1x8x128xf32>
      %c0_18 = arith.constant 0 : index
      %c0_19 = arith.constant 0 : index
      %c0_20 = arith.constant 0 : index
      %33 = vector.load %arg4[%c0_18, %c0_19, %c0_20] : memref<1x8x128xf32, #tpu.memory_space<vmem>>, vector<1x8x128xf32>
      tpu.vector_store %arg4[%c0_18, %c0_19, %c0_20], %32 {strides = array<i32>} : memref<1x8x128xf32, #tpu.memory_space<vmem>>, vector<1x8x128xf32>,
    } else {
    }
    return
  }
  func.func @transform_0(%arg0: i32, %arg1: i32) -> (i32, i32) {
    %c1_i32 = arith.constant 1 : i32
    %0 = arith.muli %arg0, %c1_i32 : i32
    %1 = arith.addi %0, %arg1 : i32
    %c0_i32 = arith.constant 0 : i32
    %c0_i32_0 = arith.constant 0 : i32
    return %1, %c0_i32 : i32, i32
  }
  func.func @transform_1(%arg0: i32, %arg1: i32) -> (i32, i32) {
    %c1_i32 = arith.constant 1 : i32
    %0 = arith.muli %arg0, %c1_i32 : i32
    %1 = arith.addi %0, %arg1 : i32
    %c0_i32 = arith.constant 0 : i32
    %c0_i32_0 = arith.constant 0 : i32
    return %1, %c0_i32 : i32, i32
  }
  func.func @transform_2(%arg0: i32, %arg1: i32) -> (i32, i32, i32) {
    %c0_i32 = arith.constant 0 : i32
    %c0_i32_0 = arith.constant 0 : i32
    %c0_i32_1 = arith.constant 0 : i32
    return %arg0, %c0_i32, %c0_i32_0 : i32, i32, i32
  }
}

</mosaic_0001>

<bundles_post_ra>
// kernel: tpu_custom_call.1
= control target key start
LH: loop header
LB: loop body
LE: loop exit
PB: predicated region body
PF: predicated region fallthrough
CT: control target
= control target key end

     0   :  { %7 = vsyncpa [#allocation4], 0  ;;  %s582_s0 = inlined_call_operand.hbm [shape: f32[8,51], index: 0, kind: input, shape index: {}]   ;;  %s583_s1 = inlined_call_operand.hbm [shape: f32[8,51], index: 1, kind: input, shape index: {}]   ;;  %s584_s2 = inlined_call_operand.hbm [shape: f32[1,8,128], index: 2, kind: output, shape index: {}]  }
   0x1   :  { %8 = vsyncpa [#allocation7], 0 }
   0x2   :  { %9 = vsyncpa [#allocation5], 0  ;;  %s510_s9 = smov [#allocation3]   ;;  %s511_s11 = smov [#allocation6]  }
   0x3   :  { %s19_s10 = sshll.u32 %s510_s9, 4  ;;  %s32_s12 = sshll.u32 %s511_s11, 4  ;;  %s20_s10 = int_to_ptr.vmem [resolvable:$true] %s19_s10  ;;  %s33_s12 = int_to_ptr.vmem [resolvable:$true] %s32_s12 }
   0x4   :  { %s438_s15 = scalar_lea.hbm %s582_s0, 128 }
   0x5   :  { %p439_p0 = scmp.ne.s32.totalorder %s582_s0, %s438_s15  ;;  %p442_p1 = scmp.lt.u32.totalorder %s438_s15, %s582_s0 }
   0x7   :  { %p444_p2 = pnand %p442_p1, %p439_p0 }
   0x9   :  { %447 = shalt.err (!%p444_p2)
}
   0xa   :  { %s448_s20 = scalar_lea.vmem %s20_s10, 128  ;;  %p453_p4 = scmp.lt.s32.totalorder %s20_s10, %s20_s10 }
   0xb   :  { %p449_p3 = scmp.ne.s32.totalorder %s20_s10, %s448_s20  ;;  %p454_p5 = scmp.lt.s32.totalorder %s448_s20, %s448_s20 }
   0xd   :  { %p455_p6 = por %p454_p5, %p453_p4 }
   0xf   :  { %p456_p7 = pnand %p455_p6, %p449_p3 }
  0x11   :  { %459 = shalt.err (!%p456_p7)
}
  0x12   :  { %22 = dma.hbm_to_vmem [thread:$0]  %s582_s0, 128, %s20_s10, [#allocation4]  }
  0x13   :  { %s460_s25 = scalar_lea.hbm %s583_s1, 128 }
  0x14   :  { %p461_p8 = scmp.ne.s32.totalorder %s583_s1, %s460_s25  ;;  %p464_p9 = scmp.lt.u32.totalorder %s460_s25, %s583_s1 }
  0x16   :  { %p466_p10 = pnand %p464_p9, %p461_p8 }
  0x18   :  { %469 = shalt.err (!%p466_p10)
}
  0x19   :  { %s470_s30 = scalar_lea.vmem %s33_s12, 128  ;;  %p475_p12 = scmp.lt.s32.totalorder %s33_s12, %s33_s12 }
  0x1a   :  { %p471_p11 = scmp.ne.s32.totalorder %s33_s12, %s470_s30  ;;  %p476_p13 = scmp.lt.s32.totalorder %s470_s30, %s470_s30 }
  0x1c   :  { %p477_p0 = por %p476_p13, %p475_p12 }
  0x1e   :  { %p478_p1 = pnand %p477_p0, %p471_p11 }
  0x20   :  { %481 = shalt.err (!%p478_p1)
}
  0x21   :  { %35 = dma.hbm_to_vmem [thread:$0]  %s583_s1, 128, %s33_s12, [#allocation7]  }
  0x22   :  { %504 = dma.done.wait [#allocation4], 128  }
  0x23   :  { %505 = vsyncadd [#allocation4], 4294967168 }
  0x24   :  { %506 = dma.done.wait [#allocation7], 128  }
  0x25   :  { %507 = vsyncadd [#allocation7], 4294967168  ;;  %vm52_vm0 = vcmask 416768   ;;  %v50_v0 = vld [vmem:[#allocation3] sm:$0xff]  ;;  %v512_v2 = vmov 0.0|0.0   ;;  %vm514_vm1 = vmmov 0  }
  0x26   :  { %v53_v1 = vsel %vm52_vm0, %v50_v0, -inf  ;;  %406 = vmatprep.subr.bf16.mxu0 %v512_v2  ;;  %412 = vmatprep.subr.bf16.mxu1 %v512_v2  ;;  %v513_v3 = vmov 1.0|1.0   ;;  %v515_v4 = vmov 0.0   ;;  %v51_v5 = vld [vmem:[#allocation6] sm:$0xff]  ;;  %vm62_vm2 = vcmask 1042432  }
  0x27   :  { %54 = vmax.xlane.f32.xlu0 %v53_v1  ;;  %407 = vmatpush3.bf16.msra.mxu0 %v513_v3  ;;  %v136_v6 = vmul.f32 %v51_v5, %v50_v0  ;;  %v516_v7 = vmov 1.0   ;;  %vm48_vm3 = vcmask 7168   ;;  %s517_s1 = smov [#allocation8]  }
  0x28   :  { %413 = vmatpush3.bf16.msra.mxu1 %v513_v3  ;;  %408 = vmatprep.subr.bf16.mxu0 %v512_v2  ;;  %49 = vst.msk [vmem:[#allocation2] sm:$0xff] %vm48_vm3, %v515_v4  ;;  %s315_s4 = sshll.u32 %s517_s1, 4  ;;  %s316_s4 = int_to_ptr.vmem [resolvable:$true] %s315_s4 }
  0x29   :  { %414 = vmatprep.subr.bf16.mxu1 %v512_v2  ;;  %369 = vmatprep.mubr.msk.f32.mxu0 %vm514_vm1, %v515_v4  ;;  %s482_s6 = scalar_lea.vmem %s316_s4, 128  ;;  %p487_p3 = scmp.lt.s32.totalorder %s316_s4, %s316_s4 }
  0x2a   :  { %386 = vmatprep.mubr.msk.f32.mxu1 %vm514_vm1, %v515_v4  ;;  %p483_p2 = scmp.ne.s32.totalorder %s316_s4, %s482_s6  ;;  %p488_p4 = scmp.lt.s32.totalorder %s482_s6, %s482_s6 }
  0x2b   :  { %409 = vmatpush3.bf16.msra.mxu0 %v513_v3 }
  0x2c   :  { %415 = vmatpush3.bf16.msra.mxu1 %v513_v3  ;;  %410 = vmatprep.subr.bf16.mxu0 %v512_v2  ;;  %p489_p5 = por %p488_p4, %p487_p3 }
  0x2d   :  { %416 = vmatprep.subr.bf16.mxu1 %v512_v2 }
  0x2e   :  { %p490_p6 = pnand %p489_p5, %p483_p2 }
  0x2f   :  { %411 = vmatpush3.bf16.msra.mxu0 %v513_v3  ;;  %v288_v22 = vld [vmem:[#allocation2] sm:$0xff] }
  0x30   :  { %417 = vmatpush3.bf16.msra.mxu1 %v513_v3  ;;  %367 = vmatprep.subr.mxu0 %v515_v4 }
  0x31   :  { %384 = vmatprep.subr.mxu1 %v515_v4 }
  0x33   :  { %368 = vmatpush3.msk.msra.mxu0 %vm62_vm2, %v516_v7 }
  0x34   :  { %385 = vmatpush3.msk.msra.mxu1 %vm62_vm2, %v516_v7  ;;  %418 = vmatprep.subr.bf16.mxu0 %v512_v2 }
  0x35   :  { %387 = vmatmul.mubr.msk.f32.vlgmr.msra.gmra.mrb[0].mxu1 %vm52_vm0, %v136_v6 }
  0xb4   :  { %v55_v8 = vpop.xlane.xlu0 %54 }
  0xb5   :  { %v56_v9 = vsub.f32 %v50_v0, %v55_v8 }
  0xb7   :  { %v57_v10 = vmul.f32 1.442695, %v56_v9 }
  0xb9   :  { %434 = vpow2.f32 %v57_v10 }
  0xc3   :  { %v435_v11 = vpop.eup %434 }
  0xc4   :  { %370 = vmatmul.mubr.msk.f32.vlgmr.msra.gmra.mrb[0].mxu0 %vm52_vm0, %v435_v11 }
  0xc5   :  { %419 = vmatpush3.bf16.msra.mxu0 %v513_v3  ;;  %403 = vmatprep.mubr.msk.f32.mxu0 %vm514_vm1, %v515_v4 }
  0xc6   :  { %420 = vmatprep.subr.bf16.mxu0 %v512_v2 }
  0xc9   :  { %421 = vmatpush3.bf16.msra.mxu0 %v513_v3 }
  0xca   :  { %422 = vmatprep.subr.bf16.mxu0 %v512_v2 }
  0xcd   :  { %423 = vmatpush3.bf16.msra.mxu0 %v513_v3 }
  0xce   :  { %401 = vmatprep.subr.mxu0 %v515_v4 }
  0xd1   :  { %402 = vmatpush3.msk.msra.mxu0 %vm62_vm2, %v516_v7 }
  0xd2   :  { %404 = vmatmul.mubr.msk.f32.vlgmr.msra.gmra.mrb[2].mxu0 %vm52_vm0, %v51_v5 }
 0x108   :  { %v206_v12 = vpop.f32.mrb[0].mxu1 }
 0x109   :  { %v388_v13 = vpop.f32.mrb[1].mxu1 }
 0x197   :  { %v132_v14 = vpop.f32.mrb[0].mxu0 }
 0x198   :  { %436 = vlog2.f32 %v132_v14  ;;  %v371_v15 = vpop.f32.mrb[1].mxu0 }
 0x1a2   :  { %v437_v16 = vpop.eup %436 }
 0x1a3   :  { %v211_v17 = vmul.f32 0.6931472, %v437_v16 }
 0x1a5   :  { %v281_v18 = vpop.f32.mrb[2].mxu0  ;;  %v285_v19 = vadd.f32 %v211_v17, %v55_v8 }
 0x1a6   :  { %v405_v20 = vpop.f32.mrb[3].mxu0 }
 0x1a7   :  { %v286_v21 = vmul.f32 %v285_v19, %v281_v18 }
 0x1a9   :  { %v287_v23 = vsub.f32 %v286_v21, %v206_v12 }
 0x1ab   :  { %v289_v24 = vadd.f32 %v288_v22, %v287_v23 }
 0x1ad   :  { %291 = vst.msk [vmem:[#allocation2] sm:$0xff] %vm48_vm3, %v289_v24 }
 0x1b4   :  { %v295_v25 = vld [vmem:[#allocation2] sm:$0xff] }
 0x1b5   :  { %v296_v26 = vsel %vm48_vm3, %v295_v25, 0.0 }
 0x1b6   :  { %297 = vadd.xlane.f32.xlu0 %v296_v26 }
 0x243   :  { %v298_v27 = vpop.xlane.xlu0 %297 }
 0x244   :  { %v299_v28 = vrot.slane %v298_v27, 4 }
 0x246   :  { %v300_v29 = vadd.f32 %v299_v28, %v298_v27 }
 0x248   :  { %v301_v30 = vrot.slane %v300_v29, 2 }
 0x24a   :  { %v302_v31 = vadd.f32 %v301_v30, %v300_v29 }
 0x24c   :  { %v303_v32 = vrot.slane %v302_v31, 1 }
 0x24e   :  { %v304_v33 = vadd.f32 %v303_v32, %v302_v31 }
 0x250   :  { %424 = vpush %v304_v33 }
 0x281   :  { %s425_s5 = spop %424 }
 0x282   :  { %v306_v34 = vstv %s425_s5 }
 0x283   :  { %308 = vst [vmem:[#allocation8] sm:$0xff] %v306_v34 }
 0x284   :  { %493 = shalt.err (!%p490_p6)
}
 0x285   :  { %s494_s9 = scalar_lea.hbm %s584_s2, 128 }
 0x286   :  { %p495_p7 = scmp.ne.s32.totalorder %s584_s2, %s494_s9  ;;  %p498_p8 = scmp.lt.u32.totalorder %s494_s9, %s584_s2 }
 0x288   :  { %p500_p9 = pnand %p498_p8, %p495_p7 }
 0x28a   :  { %503 = shalt.err (!%p500_p9)
}
 0x28b   :  { %318 = dma.vmem_to_hbm [thread:$0]  %s316_s4, 128, %s584_s2, [#allocation5]  }
 0x28c   :  { %508 = dma.done.wait [#allocation5], 128  }
 0x28d   :  { %509 = vsyncadd [#allocation5], 4294967168 }
 0x28e   :  { %322 = vsyncpa [#allocation4], 1 }
 0x28f   :  { %323 = vsyncpa [#allocation7], 1 }
 0x290   :  { %324 = vsyncpa [#allocation5], 1 }

</bundles_post_ra>
